<compile_context>
chip_gen: v7x
topology: tpu7x:2x2x1
jax: 0.10.0
libtpu: 0.0.40
codegen_flags: <defaults>
</compile_context>

<pallas_src>
import math
import numpy as np
import jax
import jax.numpy as jnp
from jax.experimental import pallas as pl
from jax.experimental.pallas import tpu as pltpu

LN_EPS = 1e-5
_MIB = 1024 * 1024


def _round_up(x, m):
    return ((x + m - 1) // m) * m


def _vmem_capacity_bytes():
    """Generation-aware VMEM capacity query (conservative fallback)."""
    try:
        return int(pltpu.get_tpu_info().vmem_capacity_bytes)
    except Exception:
        return 64 * _MIB        # v7x per-TC worst case


# ---------------------------------------------------------------------------
# Stage 1: LayerNorm + fused collapsed projection -> [ l_sum | r_sum * W_act ].
# ---------------------------------------------------------------------------
def _sums_kernel(act_ref, gamma_ref, beta_ref, rhs_ref, bias_ref, comb_ref):
    x = act_ref[0].astype(jnp.float32)                      # (tn, C_in)

    # LayerNorm over channels (biased variance, affine), like torch.nn.LayerNorm.
    mean = jnp.mean(x, axis=-1, keepdims=True)
    cen = x - mean
    var = jnp.mean(cen * cen, axis=-1, keepdims=True)
    xn = cen * jax.lax.rsqrt(var + LN_EPS)
    xn = xn * gamma_ref[0][None, :] + beta_ref[0][None, :]

    # One matmul emits [l_sum | r_sum * W_act] directly:
    #   column 0     : xn @ sum_a(W_l) + sum(b_l)                 = l_sum
    #   columns 1..C : xn @ (sum_b(W_r) * W_act[c]) + sum(b_r)*W_act[c] = r_scaled
    s = jnp.dot(xn, rhs_ref[...], preferred_element_type=jnp.float32)
    comb_ref[0] = s + bias_ref[0][None, :]                  # (tn, 1 + C_out)


# ---------------------------------------------------------------------------
# Stage 2: HBM-write-bound rank-1 broadcast with lane-dense (ti, tj*C_out) stores.
# ---------------------------------------------------------------------------
def _broadcast_kernel(lsum_ref, rflat_ref, brow_ref, out_ref):
    l_col = lsum_ref[0]                                     # (ti, 1)       f32
    r_row = rflat_ref[0]                                    # (1, tj*Cout)  f32
    out_ref[0] = (l_col * r_row + brow_ref[...]).astype(out_ref.dtype)


# ---------------------------------------------------------------------------
# Tile choosers.
# ---------------------------------------------------------------------------
def _choose_stage1_rows(N, C_in, target_bytes=2 * _MIB):
    divs = [d for d in range(1, N + 1) if N % d == 0]
    opts = [d for d in divs if d % 8 == 0] or [N]
    fitting = [d for d in opts if d * C_in * 4 <= target_bytes]
    return max(fitting) if fitting else min(opts)


def _choose_stage2_tiles(N, C_out, out_bpe, target_bytes):
    """Pick (ti, tj, padded) for the (N, N*C_out) output tiling.

    ti respects the sublane packing of the OUTPUT dtype (8 f32 / 16 bf16 /
    32 int8-fp8); tj keeps the flattened store lane-dense (tj*C_out % 128 == 0)
    unless it spans the whole row.  For awkward N with no usable divisor we pad
    up to aligned tiles (wrapper crops) instead of using a whole-array block.
    """
    pack = {1: 32, 2: 16, 4: 8}.get(out_bpe, 8)
    divs = [d for d in range(1, N + 1) if N % d == 0]
    ti_opts = [d for d in divs if d % pack == 0 or d == N]
    tj_opts = [d for d in divs if (d * C_out) % 128 == 0 or d == N]
    ti_floor = min(64, N)          # keep r_flat re-reads negligible
    best = None
    for ti in ti_opts:
        for tj in tj_opts:
            size = ti * tj * C_out * out_bpe
            if size > target_bytes:
                continue
            score = (ti >= ti_floor, size, tj * C_out, ti)
            if best is None or score > best[0]:
                best = (score, (ti, tj))
    if best is not None:
        ti, tj = best[1]
        return ti, tj, False

    # Fallback (e.g. large prime N): padded, fully aligned tiles.
    ti = pack
    while ti * 2 <= min(256, _round_up(N, pack)):
        ti *= 2
    tj_unit = 128 // math.gcd(C_out, 128)
    tj = tj_unit
    while (ti * (tj * 2) * C_out * out_bpe <= target_bytes
           and tj * 2 <= _round_up(N, tj_unit)):
        tj *= 2
    return ti, tj, True


# ---------------------------------------------------------------------------
# Wrapper.
# ---------------------------------------------------------------------------
def outer_product(act, gamma, beta, w_left, b_left, w_right, b_right,
                  w_act, b_act, *, out_dtype=None):
    B, N, C_in = act.shape
    C_out = w_act.shape[-1]
    out_dtype = jnp.dtype(out_dtype) if out_dtype is not None else jnp.dtype(act.dtype)
    out_bpe = out_dtype.itemsize
    f32 = jnp.float32
    vmem_cap = _vmem_capacity_bytes()

    # ---- weight prep (pure parameter math, once per call) ----
    w_l_sum = jnp.sum(w_left.astype(f32), axis=1)                   # (C_in,)
    w_r_sum = jnp.sum(w_right.astype(f32), axis=1)                  # (C_in,)
    wact_row = w_act.astype(f32).reshape(1, C_out)                  # (1, C_out)
    rhs = jnp.concatenate([w_l_sum[:, None],
                           w_r_sum[:, None] * wact_row], axis=1)    # (C_in, 1+C_out)
    bias_row = jnp.concatenate(
        [jnp.sum(b_left.astype(f32)).reshape(1, 1),
         jnp.sum(b_right.astype(f32)) * wact_row], axis=1)          # (1, 1+C_out)
    gamma2 = gamma.astype(f32).reshape(1, C_in)
    beta2 = beta.astype(f32).reshape(1, C_in)

    # ---- stage 1: LayerNorm + fused collapsed projections ----
    tn = _choose_stage1_rows(N, C_in)
    s1_vmem = max(16 * _MIB, 8 * tn * C_in * 4 + 4 * _MIB)
    s1_vmem = min(s1_vmem, max(16 * _MIB, int(vmem_cap * 0.75)))
    combined = pl.pallas_call(
        _sums_kernel,
        out_shape=jax.ShapeDtypeStruct((B, N, 1 + C_out), f32),
        grid_spec=pltpu.PrefetchScalarGridSpec(
            num_scalar_prefetch=0,
            grid=(B, N // tn),
            in_specs=[
                pl.BlockSpec((1, tn, C_in), lambda b, r: (b, r, 0)),     # act
                pl.BlockSpec((1, C_in), lambda b, r: (0, 0)),            # gamma
                pl.BlockSpec((1, C_in), lambda b, r: (0, 0)),            # beta
                pl.BlockSpec((C_in, 1 + C_out), lambda b, r: (0, 0)),    # fused RHS
                pl.BlockSpec((1, 1 + C_out), lambda b, r: (0, 0)),       # fused bias
            ],
            out_specs=pl.BlockSpec((1, tn, 1 + C_out), lambda b, r: (b, r, 0)),
        ),
        compiler_params=pltpu.CompilerParams(
            dimension_semantics=("parallel", "parallel"),
            vmem_limit_bytes=s1_vmem),
    )(act, gamma2, beta2, rhs, bias_row)

    lsum = combined[:, :, 0:1]                    # (B, N, 1)      f32
    r_scaled = combined[:, :, 1:]                 # (B, N, C_out)  f32 (tiny slice)

    # ---- stage 2: lane-dense rank-1 broadcast to [B, N, N*C_out] ----
    target_bytes = min(8 * _MIB, max(2 * _MIB, vmem_cap // 8))
    ti, tj, padded = _choose_stage2_tiles(N, C_out, out_bpe, target_bytes)
    Ni = _round_up(N, ti)
    Nj = _round_up(N, tj)
    tjc = tj * C_out

    if padded:
        # Rare fallback (awkward N): pad tiny stage-1 outputs; crop afterwards.
        lsum_in = jnp.pad(lsum, ((0, 0), (0, Ni - N), (0, 0)))
        r_in = jnp.pad(r_scaled, ((0, 0), (0, Nj - N), (0, 0)))
    else:
        lsum_in, r_in = lsum, r_scaled
    # Free row-major reshape: r[b, j, c] -> r_flat[b, 0, j*C_out + c].
    r_flat = r_in.reshape(B, 1, Nj * C_out)
    # Per-tile bias row: b_row[0, j*C_out + c] = b_act[c].
    b_row = jnp.tile(b_act.astype(f32).reshape(1, C_out), (1, tj))

    tile_bytes = ti * tjc * out_bpe
    s2_vmem = max(16 * _MIB, 3 * tile_bytes + 4 * _MIB)          # double-buffered tile + headroom
    s2_vmem = min(s2_vmem, max(16 * _MIB, int(vmem_cap * 0.75)))

    bytes_out = B * Ni * Nj * C_out * out_bpe
    cost = pl.CostEstimate(flops=2 * B * Ni * Nj * C_out,
                           transcendentals=0,
                           bytes_accessed=bytes_out + B * N * (C_out + 1) * 4)

    out_flat = pl.pallas_call(
        _broadcast_kernel,
        out_shape=jax.ShapeDtypeStruct((B, Ni, Nj * C_out), out_dtype),
        grid_spec=pltpu.PrefetchScalarGridSpec(
            num_scalar_prefetch=0,
            # Big i axis FIRST so the v7x 2-TC split lands on it even if B == 1.
            grid=(Ni // ti, B, Nj // tj),
            in_specs=[
                pl.BlockSpec((1, ti, 1), lambda i, b, j: (b, i, 0)),      # l_sum
                pl.BlockSpec((1, 1, tjc), lambda i, b, j: (b, 0, j)),     # r_flat
                pl.BlockSpec((1, tjc), lambda i, b, j: (0, 0)),           # bias row
            ],
            out_specs=pl.BlockSpec((1, ti, tjc), lambda i, b, j: (b, i, j)),
        ),
        compiler_params=pltpu.CompilerParams(
            dimension_semantics=("parallel", "parallel", "parallel"),
            vmem_limit_bytes=s2_vmem),
        cost_estimate=cost,
    )(lsum_in, r_flat, b_row)

    if padded:
        out_flat = out_flat[:, :N, :N * C_out]
    return out_flat.reshape(B, N, N, C_out)


# ---------------------------------------------------------------------------
# Pure-JAX reference (mirrors the PyTorch module).
# ---------------------------------------------------------------------------
def reference(act, gamma, beta, w_left, b_left, w_right, b_right, w_act, b_act):
    x = act.astype(jnp.float32)
    mean = jnp.mean(x, axis=-1, keepdims=True)
    var = jnp.mean((x - mean) ** 2, axis=-1, keepdims=True)
    xn = (x - mean) / jnp.sqrt(var + LN_EPS) * gamma + beta
    left = xn @ w_left + b_left
    right = xn @ w_right + b_right
    outer = jnp.einsum('bia,bjc->bij', left, right)   # == channel-sum outer product
    out = outer[..., None] * w_act[0][None, None, None, :] + b_act
    return out.astype(act.dtype)


if __name__ == "__main__":
    # Small shapes consistent with the module.
    B, N = 2, 8
    C_in = 32          # num_input_channel
    C_outer = 16       # config.num_outer_channel
    C_out = 8          # num_output_channel

    key = jax.random.PRNGKey(0)
    k_act, k_wl, k_wr, k_wa = jax.random.split(key, 4)

    act = jax.random.normal(k_act, (B, N, C_in), dtype=jnp.float32)

    # Deterministic parameter init mirroring the module's __init__.
    gamma = jnp.ones((C_in,), jnp.float32)      # LayerNorm defaults
    beta = jnp.zeros((C_in,), jnp.float32)
    std_proj = math.sqrt(1.0 / C_in)            # initializer='linear'
    w_left = jax.random.normal(k_wl, (C_in, C_outer), jnp.float32) * std_proj
    b_left = jnp.zeros((C_outer,), jnp.float32)
    w_right = jax.random.normal(k_wr, (C_in, C_outer), jnp.float32) * std_proj
    b_right = jnp.zeros((C_outer,), jnp.float32)
    w_act = jax.random.normal(k_wa, (1, C_out), jnp.float32) * 1.0  # Linear(1, C_out)
    b_act = jnp.zeros((C_out,), jnp.float32)

    ref = reference(act, gamma, beta, w_left, b_left, w_right, b_right,
                    w_act, b_act)

    # Default path: out_dtype follows act.dtype (f32) -> exact-ish comparison.
    out = outer_product(act, gamma, beta, w_left, b_left, w_right, b_right,
                        w_act, b_act)
    out = jax.block_until_ready(out)
    np.testing.assert_allclose(np.asarray(out), np.asarray(ref),
                               rtol=1e-4, atol=1e-4)

    # Reduced-precision output path (halves HBM write bytes on the write-bound
    # stage); math stays f32 in-kernel, cast only at the store.
    out_bf16 = outer_product(act, gamma, beta, w_left, b_left, w_right, b_right,
                             w_act, b_act, out_dtype=jnp.bfloat16)
    out_bf16 = jax.block_until_ready(out_bf16)
    np.testing.assert_allclose(np.asarray(out_bf16).astype(np.float32),
                               np.asarray(ref), rtol=1e-1, atol=1e-1)

    print("KERNEL_OK")
</pallas_src>

<mosaic_0001>
module attributes {stable_mosaic.version = 11 : i64} {
  func.func @_sums_kernel(%arg0: i32, %arg1: i32, %arg2: memref<1x8x32xf32, #tpu.memory_space<vmem>>, %arg3: memref<1x32xf32, #tpu.memory_space<vmem>>, %arg4: memref<1x32xf32, #tpu.memory_space<vmem>>, %arg5: memref<32x9xf32, #tpu.memory_space<vmem>>, %arg6: memref<1x9xf32, #tpu.memory_space<vmem>>, %arg7: memref<1x8x9xf32, #tpu.memory_space<vmem>>) attributes {dimension_semantics = [#tpu.dimension_semantics<parallel>, #tpu.dimension_semantics<parallel>], iteration_bounds = array<i64: 2, 1>, scalar_prefetch = 0 : i64, scratch_operands = 0 : i64, tpu.core_type = #tpu.core_type<tc>, window_params = [{transform_indices = @transform_0, window_bounds = array<i64: 1, 8, 32>}, {pipeline_mode = #tpu.pipeline_mode<synchronous>, transform_indices = @transform_1, window_bounds = array<i64: 1, 32>}, {pipeline_mode = #tpu.pipeline_mode<synchronous>, transform_indices = @transform_2, window_bounds = array<i64: 1, 32>}, {pipeline_mode = #tpu.pipeline_mode<synchronous>, transform_indices = @transform_3, window_bounds = array<i64: 32, 9>}, {pipeline_mode = #tpu.pipeline_mode<synchronous>, transform_indices = @transform_4, window_bounds = array<i64: 1, 9>}, {transform_indices = @transform_5, window_bounds = array<i64: 1, 8, 9>}]} {
    %c0 = arith.constant 0 : index
    %c0_0 = arith.constant 0 : index
    %c0_1 = arith.constant 0 : index
    %0 = vector.load %arg2[%c0, %c0_0, %c0_1] : memref<1x8x32xf32, #tpu.memory_space<vmem>>, vector<1x8x32xf32>
    %1 = vector.shape_cast %0 : vector<1x8x32xf32> to vector<8x32xf32>
    %cst = arith.constant dense<0.000000e+00> : vector<8xf32>
    %2 = vector.multi_reduction <add>, %1, %cst [1] : vector<8x32xf32> to vector<8xf32>
    %3 = vector.shape_cast %2 : vector<8xf32> to vector<8x1xf32>
    %cst_2 = arith.constant 3.200000e+01 : f32
    %4 = vector.broadcast %cst_2 : f32 to vector<8x1xf32>
    %5 = arith.divf %3, %4 : vector<8x1xf32>
    %6 = vector.broadcast %5 : vector<8x1xf32> to vector<8x32xf32>
    %7 = arith.subf %1, %6 : vector<8x32xf32>
    %8 = arith.mulf %7, %7 : vector<8x32xf32>
    %cst_3 = arith.constant dense<0.000000e+00> : vector<8xf32>
    %9 = vector.multi_reduction <add>, %8, %cst_3 [1] : vector<8x32xf32> to vector<8xf32>
    %10 = vector.shape_cast %9 : vector<8xf32> to vector<8x1xf32>
    %cst_4 = arith.constant 3.200000e+01 : f32
    %11 = vector.broadcast %cst_4 : f32 to vector<8x1xf32>
    %12 = arith.divf %10, %11 : vector<8x1xf32>
    %cst_5 = arith.constant 9.99999974E-6 : f32
    %13 = vector.broadcast %cst_5 : f32 to vector<8x1xf32>
    %14 = arith.addf %12, %13 : vector<8x1xf32>
    %15 = math.rsqrt %14 : vector<8x1xf32>
    %16 = vector.broadcast %15 : vector<8x1xf32> to vector<8x32xf32>
    %17 = arith.mulf %7, %16 : vector<8x32xf32>
    %c0_6 = arith.constant 0 : index
    %c0_7 = arith.constant 0 : index
    %18 = vector.load %arg3[%c0_6, %c0_7] : memref<1x32xf32, #tpu.memory_space<vmem>>, vector<1x32xf32>
    %19 = vector.shape_cast %18 : vector<1x32xf32> to vector<32xf32>
    %20 = vector.shape_cast %19 : vector<32xf32> to vector<1x32xf32>
    %21 = vector.broadcast %20 : vector<1x32xf32> to vector<8x32xf32>
    %22 = arith.mulf %17, %21 : vector<8x32xf32>
    %c0_8 = arith.constant 0 : index
    %c0_9 = arith.constant 0 : index
    %23 = vector.load %arg4[%c0_8, %c0_9] : memref<1x32xf32, #tpu.memory_space<vmem>>, vector<1x32xf32>
    %24 = vector.shape_cast %23 : vector<1x32xf32> to vector<32xf32>
    %25 = vector.shape_cast %24 : vector<32xf32> to vector<1x32xf32>
    %26 = vector.broadcast %25 : vector<1x32xf32> to vector<8x32xf32>
    %27 = arith.addf %22, %26 : vector<8x32xf32>
    %c0_10 = arith.constant 0 : index
    %c0_11 = arith.constant 0 : index
    %28 = vector.load %arg5[%c0_10, %c0_11] : memref<32x9xf32, #tpu.memory_space<vmem>>, vector<32x9xf32>
    %cst_12 = arith.constant dense<0.000000e+00> : vector<8x9xf32>
    %29 = tpu.matmul %27, %28, %cst_12 {dimension_numbers = #tpu.dot_dimension_numbers<[1], [0], [0], [1], [0, 0, 1, 1], [], []>} : vector<8x32xf32>, vector<32x9xf32>, vector<8x9xf32> -> vector<8x9xf32>
    %c0_13 = arith.constant 0 : index
    %c0_14 = arith.constant 0 : index
    %30 = vector.load %arg6[%c0_13, %c0_14] : memref<1x9xf32, #tpu.memory_space<vmem>>, vector<1x9xf32>
    %31 = vector.shape_cast %30 : vector<1x9xf32> to vector<9xf32>
    %32 = vector.shape_cast %31 : vector<9xf32> to vector<1x9xf32>
    %33 = vector.broadcast %32 : vector<1x9xf32> to vector<8x9xf32>
    %34 = arith.addf %29, %33 : vector<8x9xf32>
    %c0_15 = arith.constant 0 : index
    %c0_16 = arith.constant 0 : index
    %c0_17 = arith.constant 0 : index
    %35 = vector.load %arg7[%c0_15, %c0_16, %c0_17] : memref<1x8x9xf32, #tpu.memory_space<vmem>>, vector<1x8x9xf32>
    %36 = vector.shape_cast %35 : vector<1x8x9xf32> to vector<8x9xf32>
    %37 = vector.shape_cast %34 : vector<8x9xf32> to vector<1x8x9xf32>
    tpu.vector_store %arg7[%c0_15, %c0_16, %c0_17], %37 {strides = array<i32>} : memref<1x8x9xf32, #tpu.memory_space<vmem>>, vector<1x8x9xf32>,
    return
  }
  func.func @transform_0(%arg0: i32, %arg1: i32) -> (i32, i32, i32) {
    %c0_i32 = arith.constant 0 : i32
    %c0_i32_0 = arith.constant 0 : i32
    return %arg0, %arg1, %c0_i32 : i32, i32, i32
  }
  func.func @transform_1(%arg0: i32, %arg1: i32) -> (i32, i32) {
    %c0_i32 = arith.constant 0 : i32
    %c0_i32_0 = arith.constant 0 : i32
    %c0_i32_1 = arith.constant 0 : i32
    return %c0_i32, %c0_i32_0 : i32, i32
  }
  func.func @transform_2(%arg0: i32, %arg1: i32) -> (i32, i32) {
    %c0_i32 = arith.constant 0 : i32
    %c0_i32_0 = arith.constant 0 : i32
    %c0_i32_1 = arith.constant 0 : i32
    return %c0_i32, %c0_i32_0 : i32, i32
  }
  func.func @transform_3(%arg0: i32, %arg1: i32) -> (i32, i32) {
    %c0_i32 = arith.constant 0 : i32
    %c0_i32_0 = arith.constant 0 : i32
    %c0_i32_1 = arith.constant 0 : i32
    return %c0_i32, %c0_i32_0 : i32, i32
  }
  func.func @transform_4(%arg0: i32, %arg1: i32) -> (i32, i32) {
    %c0_i32 = arith.constant 0 : i32
    %c0_i32_0 = arith.constant 0 : i32
    %c0_i32_1 = arith.constant 0 : i32
    return %c0_i32, %c0_i32_0 : i32, i32
  }
  func.func @transform_5(%arg0: i32, %arg1: i32) -> (i32, i32, i32) {
    %c0_i32 = arith.constant 0 : i32
    %c0_i32_0 = arith.constant 0 : i32
    return %arg0, %arg1, %c0_i32 : i32, i32, i32
  }
}

</mosaic_0001>

<bundles_post_ra>
// kernel: tpu_custom_call.1
= control target key start
LH: loop header
LB: loop body
LE: loop exit
PB: predicated region body
PF: predicated region fallthrough
CT: control target
= control target key end

     0   :  { %10 = vsyncpa [#allocation3], 0  ;;  %s796_s0 = inlined_call_operand.vmem [shape: f32[2,8,32], index: 0, kind: input, shape index: {}]   ;;  %s797_s1 = inlined_call_operand.vmem [shape: f32[1,32], index: 1, kind: input, shape index: {}]   ;;  %s798_s2 = inlined_call_operand.vmem [shape: f32[1,32], index: 2, kind: input, shape index: {}]   ;;  %s799_s3 = inlined_call_operand.vmem [shape: f32[32,9], index: 3, kind: input, shape index: {}]   ;;  %s800_s4 = inlined_call_operand.vmem [shape: f32[1,9], index: 4, kind: input, shape index: {}]   ;;  %s801_s5 = inlined_call_operand.hbm [shape: f32[2,8,9], index: 5, kind: output, shape index: {}]  }
   0x1   :  { %12 = vsyncpa [#allocation3 + $0x1], 0  ;;  %s660_s18 = smov 0   ;;  %s662_s19 = smov 0  }
   0x2   :  { %s664_s20 = smov 0   ;;  %s666_s21 = smov 0  }
   0x3   :  { %s668_s22 = smov 0   ;;  %s670_s23 = smov 0  }
   0x4 LB: > { %s449_s24 = sadd.s32 4294967295, %s624_s23   ;;  %s450_s25 = sadd.s32 4294967294, %s624_s23   ;;  %s624_s23 = sphi %s670_s23, %s18_s23   ;;  %s620_s22 = sphi %s668_s22, %s808_s22   ;;  %s616_s21 = sphi %s666_s21, %s807_s21   ;;  %s612_s20 = sphi %s664_s20, %s806_s20   ;;  %s608_s19 = sphi %s662_s19, %s805_s19   ;;  %s604_s18 = sphi %s660_s18, %s804_s18  }
   0x5   : > { %s30_s26 = sadd.s32 1, %s620_s22  ;;  %s151_s27 = sadd.s32 1, %s612_s20 }
   0x6   : > { %p32_p0 = scmp.ge.s32.totalorder %s30_s26, 2  ;;  %p161_p1 = scmp.ne.s32.totalorder %s612_s20, %s608_s19 }
   0x7   : > { %p162_p2 = scmp.eq.s32.totalorder %s449_s24, 1  ;;  %p167_p3 = scmp.ne.s32.totalorder %s608_s19, %s604_s18 }
   0x8   : > { %s810_s26 = smov (%p32_p0, %s30_s26), 0  ;;  %p168_p5 = scmp.eq.s32.totalorder %s450_s25, 1 }
   0x9   : > { %p700_p4 = por %p162_p2, %p161_p1  ;;  %s146_s29 = ssub.s32 %s620_s22, %s810_s26 }
   0xa   : > { %p453_p6 = scmp.ge.s32.totalorder %s624_s23, 1  ;;  %p149_p7 = scmp.eq.s32.totalorder %s146_s29, 0 }
   0xb   : > { %p707_p8 = por %p168_p5, %p167_p3  ;;  %p208_p9 = scmp.lt.s32.totalorder %s624_s23, 3 }
   0xc   : > { %s713_s6 = scalar_select %p149_p7, %s612_s20, %s151_s27  }
   0xd   : > { %p209_p10 = pnand %p453_p6, %p208_p9 }
   0xe   : > { %p238_p11 = scmp.lt.s32.totalorder (!%p209_p10), %s616_s21, 1  ;;  %vm246_vm0 = vcmask (!%p209_p10), 261120   ;;  %v277_v7 = vld [vmem:[%s799_s3] sm:$0xff] (!%p209_p10)  ;;  %v278_v8 = vld [vmem:[%s799_s3 + $0x8] sm:$0xff] (!%p209_p10)  ;;  %v279_v9 = vld [vmem:[%s799_s3 + $0x10] sm:$0xff] (!%p209_p10)  ;;  %v626_v10 = vmov (!%p209_p10), 0.0|0.0  }
   0xf   : > { %212 = sbr.rel (%p209_p10) target bundleno = 568 (0x238), region = 40  ;;  %480 = vmatprep.subr.bf16.mxu0 (!%p209_p10), %v626_v10  ;;  %v481_v11 = vpack.c.bf16 (!%p209_p10), %v278_v8, %v277_v7  ;;  %v280_v12 = vld [vmem:[%s799_s3 + $0x18] sm:$0xff] (!%p209_p10)  ;;  %vm627_vm1 = vmmov (!%p209_p10), 0   ;;  %v628_v13 = vmov (!%p209_p10), 0.0   ;;  %v456_v19 = vld [vmem:[%s797_s1] ss:$0 sm:$0xff] (!%p209_p10) }
  0x10   : > { %477 = vmatprep.mubr.msk.f32.mxu0 (!%p209_p10), %vm627_vm1, %v628_v13  ;;  %v484_v14 = vpack.c.bf16 (!%p209_p10), %v280_v12, %v279_v9  ;;  %v457_v21 = vld [vmem:[%s798_s2] ss:$0 sm:$0xff] (!%p209_p10)  ;;  %s235_s9 = sand.u32 (!%p209_p10), 1, %s608_s19   ;;  %s461_s13 = sshll.u32 (!%p209_p10), %s616_s21, 7  ;;  %vm361_vm2 = vcmask (!%p209_p10), 72704  }
  0x11   : > { %482 = vmatpush3.bf16.msra.mxu0 (!%p209_p10), %v481_v11  ;;  %s454_s10 = sshll.u32 (!%p209_p10), %s235_s9, 3  ;;  %v458_v24 = vld [vmem:[%s800_s4] ss:$0 sm:$0xff] (!%p209_p10)  ;;  %s749_s24 = scalar_lea.hbm (!%p209_p10), %s801_s5, %s461_s13 }
  0x12   : > { %483 = vmatprep.subr.bf16.mxu0 (!%p209_p10), %v626_v10  ;;  %s237_s14 = scalar_lea.vmem (!%p209_p10), [#allocation2], %s454_s10  ;;  %s364_s25 = scalar_lea.sflag (!%p209_p10), [#allocation3], %s235_s9 }
  0x13   : > { %s378_s15 = sshll.u32 (!%p209_p10), %s237_s14, 4  ;;  %s751_s15 = int_to_ptr.vmem [resolvable:$true] %s378_s15 }
  0x14   : > { %s546_s27 = scalar_lea.vmem (!%p209_p10), %s751_s15, 128 }
  0x15   : > { %485 = vmatpush3.bf16.msra.mxu0 (!%p209_p10), %v484_v14  ;;  %p547_p12 = scmp.ne.s32.totalorder (!%p209_p10), %s751_s15, %s546_s27 }
  0x16   : > { %s239_s7 = scalar_select %p238_p11, %s616_s21, 1 }
  0x17   : > { %p548_p13 = pnand %p547_p12, %p700_p4  ;;  %s629_s21 = smov [#allocation2]  }
  0x18   : > { %s455_s8 = sshll.u32 %s239_s7, 3  ;;  %s550_s29 = sshll.u32 %s629_s21, 4  ;;  %s551_s29 = int_to_ptr.vmem [resolvable:$false] %s550_s29 }
  0x19   : > { %s244_s11 = scalar_lea.vmem %s796_s0, %s455_s8  ;;  %p549_p0 = pneg %p548_p13 }
  0x1a   : > { %v245_v0 = vld [vmem:[%s244_s11] sm:$0xff]  ;;  %s552_s7 = scalar_lea.vmem %s551_s29, 256  ;;  %p553_p1 = scmp.lt.s32.totalorder %s751_s15, %s551_s29 }
  0x1b   : > { %v247_v1 = vsel %vm246_vm0, %v245_v0, 0.0  ;;  %p554_p2 = scmp.lt.s32.totalorder %s552_s7, %s546_s27 }
  0x1c   : > { %248 = vadd.xlane.f32.xlu0 %v247_v1 }
  0x1d   : > { %p555_p3 = por %p554_p2, %p553_p1 }
  0x1f   : > { %p556_p5 = pnand %p555_p3, %p549_p0 }
  0xa9   : > { %v249_v2 = vpop.xlane.xlu0 %248 }
  0xaa   : > { %v251_v3 = vmul.f32 0.03125, %v249_v2 }
  0xac   : > { %v252_v4 = vsub.f32 %v245_v0, %v251_v3 }
  0xae   : > { %v253_v5 = vmul.f32 %v252_v4, %v252_v4 }
  0xb0   : > { %v254_v6 = vsel %vm246_vm0, %v253_v5, 0.0 }
  0xb1   : > { %255 = vadd.xlane.f32.xlu0 %v254_v6 }
 0x13e   : > { %v256_v15 = vpop.xlane.xlu0 %255 }
 0x13f   : > { %v257_v16 = vmul.f32 0.03125, %v256_v15 }
 0x141   : > { %v258_v17 = vadd.f32 1e-05, %v257_v16 }
 0x143   : > { %544 = vrsqrt.f32 %v258_v17 }
 0x14d   : > { %v545_v18 = vpop.eup %544 }
 0x14e   : > { %v260_v20 = vmul.f32 %v545_v18, %v252_v4 }
 0x150   : > { %v268_v22 = vmul.f32 %v456_v19, %v260_v20 }
 0x152   : > { %v276_v23 = vadd.f32 %v457_v21, %v268_v22 }
 0x154   : > { %478 = vmatmul.mubr.msk.f32.vlgmr.msra.gmra.mrb[0].mxu0 %vm246_vm0, %v276_v23 }
 0x227   : > { %v357_v25 = vpop.f32.mrb[0].mxu0 }
 0x228   : > { %v358_v26 = vadd.f32 %v458_v24, %v357_v25  ;;  %v479_v27 = vpop.f32.mrb[1].mxu0 }
 0x22a   : > { %362 = vst.msk [vmem:[%s237_s14] sm:$0xff] %vm361_vm2, %v358_v26 }
 0x22b   : > { %559 = shalt.err (!%p556_p5)
}
 0x22c   : > { %s560_s8 = scalar_lea.hbm %s749_s24, 128  ;;  %s564_s11 = scalar_lea.hbm %s801_s5, 256 }
 0x22d   : > { %p561_p6 = scmp.ne.s32.totalorder %s749_s24, %s560_s8  ;;  %p565_p10 = scmp.lt.u32.totalorder %s749_s24, %s801_s5 }
 0x22e   : > { %p566_p11 = scmp.lt.u32.totalorder %s564_s11, %s560_s8  ;;  %p568_p13 = scmp.lt.u32.totalorder %s560_s8, %s749_s24 }
 0x22f   : > { %p562_p7 = pnand %p561_p6, %p700_p4 }
 0x230   : > { %p567_p12 = por %p566_p11, %p565_p10 }
 0x231   : > { %p563_p9 = pneg %p562_p7 }
 0x232   : > { %p569_p0 = por %p568_p13, %p567_p12 }
 0x234   : > { %p570_p1 = pnand %p569_p0, %p563_p9 }
 0x236   : > { %573 = shalt.err (!%p570_p1)
}
 0x237   : > { %486 = dma.vmem_to_hbm [thread:$0]  (%p700_p4), %s751_s15, 128, %s749_s24, %s364_s25  }
 0x238 PF: > { %p492_p2 = scmp.ge.s32.totalorder %s624_s23, 2  ;;  %s390_s14 = sand.u32 1, %s604_s18  }
 0x239   : > { %s391_s16 = scalar_lea.sflag [#allocation3], %s390_s14 }
 0x23a   : > { %p489_p3 = pnand %p492_p2, %p707_p8 }
 0x23c   : > { %599 = dma.done.wait (!%p489_p3), %s391_s16, 128  }
 0x23d   : > { %601 = vsyncadd (!%p489_p3), %s391_s16, 4294967168  ;;  %s18_s23 = sadd.s32 1, %s624_s23   ;;  %s804_s18 = smov %s608_s19 }
 0x23e   : > { %p15_p5 = scmp.ge.s32.totalorder %s18_s23, 4   ;;  %s805_s19 = smov %s612_s20 }
 0x23f   : > { %s806_s20 = smov %s713_s6  ;;  %s807_s21 = smov %s620_s22 }
 0x240   : > { %s808_s22 = smov %s810_s26  ;;  %17 = sbr.rel (!%p15_p5) target bundleno = 4 (0x4), region = 75 }
 0x247   :  { %396 = vsyncpa [#allocation3], 1 }
 0x248   :  { %398 = vsyncpa [#allocation3 + $0x1], 1 }

</bundles_post_ra>
